<compile_context>
chip_gen: v7x
topology: tpu7x:2x2x1
jax: 0.10.0
libtpu: 0.0.40
codegen_flags: <defaults>
</compile_context>

<pallas_src>
import functools

import jax
import jax.numpy as jnp
import numpy as np
from jax import lax
from jax.experimental import pallas as pl
from jax.experimental.pallas import tpu as pltpu


_LANE = 128


def _cdiv(a, b):
    return -(-a // b)


def _channel_attention_kernel(x_ref, w1t_ref, w2t_ref, o_ref, sum_acc, max_acc,
                              *, hw_total, mask_tail, row_unroll):
    # x_ref  : VMEM (block_b, C, block_hw)  — one chunk of flattened images
    # w1t_ref: VMEM (C,  Cr)                — fc1 weight, transposed (resident)
    # w2t_ref: VMEM (Cr, C)                 — fc2 weight, transposed (resident)
    # o_ref  : VMEM (block_b, C)            — lane-dense attention tile
    # sum_acc/max_acc: VMEM (block_b, C) f32 running spatial sum / max
    h = pl.program_id(1)
    block_b, _, hw_blk = x_ref.shape

    @pl.when(h == 0)
    def _init():
        sum_acc[...] = jnp.zeros_like(sum_acc)
        max_acc[...] = jnp.full_like(max_acc, -jnp.inf)

    if mask_tail:
        # The last HW chunk runs past the array; mask the out-of-range lanes so
        # they do not contaminate the running sum / max.  (Hoisted out of the
        # per-row loop — JAX does not CSE broadcasts.)
        lane_idx = lax.broadcasted_iota(jnp.int32, (1, hw_blk), 1)
        keep = lane_idx < (hw_total - h * hw_blk)
    else:
        keep = None

    def row_body(i, carry):
        row = x_ref[i].astype(jnp.float32)                       # (C, hw_blk)
        if keep is not None:
            row_s = jnp.where(keep, row, 0.0)
            row_m = jnp.where(keep, row, -jnp.inf)
        else:
            row_s = row
            row_m = row
        sum_acc[i, :] = sum_acc[i, :] + jnp.sum(row_s, axis=-1)
        max_acc[i, :] = jnp.maximum(max_acc[i, :], jnp.max(row_m, axis=-1))
        return carry

    # One batch row at a time: bounds the live value to a single (C, hw_blk)
    # slab instead of materialising the whole block before the reductions.
    lax.fori_loop(0, block_b, row_body, 0, unroll=row_unroll)

    @pl.when(h == pl.num_programs(1) - 1)
    def _finalize():
        avg = sum_acc[...] * (1.0 / hw_total)                     # (block_b, C)
        mx = max_acc[...]
        # Shared MLP.  fc2 is linear, so the two ReLU branches are summed
        # *before* fc2 (halves fc2 work, no sublane concatenate).
        h_avg = jnp.maximum(
            jnp.dot(avg, w1t_ref[...], preferred_element_type=jnp.float32), 0.0)
        h_max = jnp.maximum(
            jnp.dot(mx, w1t_ref[...], preferred_element_type=jnp.float32), 0.0)
        logits = jnp.dot(h_avg + h_max, w2t_ref[...],
                         preferred_element_type=jnp.float32)
        o_ref[...] = jax.nn.sigmoid(logits).astype(o_ref.dtype)   # lane-dense


def _pick_tiles(N, C, HW, itemsize, buf_budget):
    """Choose (block_b, block_hw) for streaming the (N, C, HW) input."""
    # HW (reduction) axis: chunk so one (C, block_hw) row slab is ~<=512 KiB,
    # bounding vreg pressure in the per-row reduction loop.  Chunks must be a
    # multiple of 128 lanes unless they span all of HW (BlockSpec tiling rule);
    # an out-of-bounds tail chunk is masked in-kernel.
    row_target = 512 << 10
    if HW <= _LANE or C * HW * itemsize <= row_target:
        block_hw = HW
    else:
        block_hw = max(_LANE, (row_target // (C * itemsize)) // _LANE * _LANE)
        block_hw = min(block_hw, HW)
    row_bytes = C * block_hw * itemsize

    # Batch axis: fill the per-buffer VMEM budget but keep >=4 batch grid steps
    # when N allows (>=2 per TensorCore on v7x).  For the 2-D (N, C) output
    # tiling, block_b must be a multiple of 8 or span the whole batch.
    block_b = min(N, max(1, buf_budget // max(row_bytes, 1)))
    if N >= 4:
        block_b = min(block_b, _cdiv(N, 4))
    if block_b != N:
        block_b = min(N, max(8, (block_b // 8) * 8))
        # If sublane rounding pushed the double-buffered block over budget,
        # shrink the HW chunk instead (any 128-lane multiple stays legal).
        while block_b * C * block_hw * itemsize > buf_budget and block_hw > _LANE:
            block_hw = max(_LANE, (block_hw // 2) // _LANE * _LANE)
    return block_b, block_hw


def channel_attention(x, w_fc1, w_fc2, *, block_b=None, block_hw=None):
    """x: (N, C, H, W) float (f32 or bf16).
       w_fc1: (C//ratio, C, 1, 1) — Conv2d 1x1, no bias.
       w_fc2: (C, C//ratio, 1, 1) — Conv2d 1x1, no bias.
       Returns the (N, C, 1, 1) f32 channel-attention map."""
    N, C, H, W = x.shape
    Cr = w_fc1.shape[0]
    HW = H * W
    itemsize = x.dtype.itemsize

    x3 = x.reshape(N, C, HW)                              # lane axis = H*W
    w1t = w_fc1.reshape(Cr, C).T.astype(jnp.float32)      # (C, Cr)
    w2t = w_fc2.reshape(C, Cr).T.astype(jnp.float32)      # (Cr, C)

    # Generation-aware VMEM budget (v5e/v6e: 128 MiB, v7x: 64 MiB per core).
    # ~1/8 of physical VMEM per (double-buffered) input buffer, capped at 12 MiB.
    try:
        vmem_cap = int(getattr(pltpu.get_tpu_info(), "vmem_capacity_bytes",
                               64 << 20))
    except Exception:                                      # conservative fallback
        vmem_cap = 64 << 20
    buf_budget = min(vmem_cap // 8, 12 << 20)

    auto_b, auto_hw = _pick_tiles(N, C, HW, itemsize, buf_budget)
    if block_b is None:
        block_b = auto_b
    if block_hw is None:
        block_hw = auto_hw

    nb = _cdiv(N, block_b)                                 # cdiv grid: no divisor hunt
    nh = _cdiv(HW, block_hw)
    mask_tail = (HW % block_hw) != 0
    row_unroll = max(1, min(block_b, 8))

    in_block_bytes = block_b * C * block_hw * itemsize
    # Explicit scoped-VMEM limit: double-buffered input + headroom, >= 16 MiB,
    # and well under physical VMEM on every generation (incl. v7x's 64 MiB).
    vmem_limit = int(min(max(2 * in_block_bytes + (8 << 20), 16 << 20),
                         (vmem_cap * 3) // 4))

    kernel = functools.partial(_channel_attention_kernel,
                               hw_total=HW, mask_tail=mask_tail,
                               row_unroll=row_unroll)

    cost = pl.CostEstimate(
        flops=2 * N * C * HW + 6 * N * C * Cr,
        transcendentals=N * C,
        bytes_accessed=N * C * HW * itemsize + N * C * 4 + 2 * C * Cr * 4,
    )

    att = pl.pallas_call(
        kernel,
        out_shape=jax.ShapeDtypeStruct((N, C), jnp.float32),   # lane-dense 2-D out
        grid=(nb, nh),
        in_specs=[
            # (C, block_hw): C spans the full dim; block_hw is a 128-multiple or
            # the full HW -> always a legal, lane-dense tiling.
            pl.BlockSpec((block_b, C, block_hw), lambda b, h: (b, 0, h)),
            pl.BlockSpec((C, Cr), lambda b, h: (0, 0)),         # fc1^T (VMEM-resident)
            pl.BlockSpec((Cr, C), lambda b, h: (0, 0)),         # fc2^T
        ],
        out_specs=pl.BlockSpec((block_b, C), lambda b, h: (b, 0)),
        scratch_shapes=[
            pltpu.VMEM((block_b, C), jnp.float32),              # running sum
            pltpu.VMEM((block_b, C), jnp.float32),              # running max
        ],
        compiler_params=pltpu.CompilerParams(
            dimension_semantics=("parallel", "arbitrary"),
            vmem_limit_bytes=vmem_limit),
        cost_estimate=cost,
    )(x3, w1t, w2t)

    return att.reshape(N, C, 1, 1)


def channel_attention_reference(x, w_fc1, w_fc2):
    avg = jnp.mean(x, axis=(2, 3), keepdims=True)          # AdaptiveAvgPool2d(1)
    mx = jnp.max(x, axis=(2, 3), keepdims=True)            # AdaptiveMaxPool2d(1)

    def mlp(p):
        h = lax.conv_general_dilated(
            p, w_fc1, window_strides=(1, 1), padding="VALID",
            dimension_numbers=("NCHW", "OIHW", "NCHW"))
        h = jnp.maximum(h, 0.0)
        return lax.conv_general_dilated(
            h, w_fc2, window_strides=(1, 1), padding="VALID",
            dimension_numbers=("NCHW", "OIHW", "NCHW"))

    return jax.nn.sigmoid(mlp(avg) + mlp(mx))


if __name__ == "__main__":
    key = jax.random.PRNGKey(0)
    kx, k1, k2, kx2 = jax.random.split(key, 4)

    # in_planes must be divisible by ratio=8, so use C=32 -> hidden = 4.
    N, C, H, W = 2, 32, 16, 16
    ratio = 8
    Cr = C // ratio

    x = jax.random.normal(kx, (N, C, H, W), dtype=jnp.float32)

    # PyTorch Conv2d default-style uniform init (deterministic; exact law irrelevant).
    bound1 = 1.0 / np.sqrt(C * 1 * 1)
    w_fc1 = jax.random.uniform(k1, (Cr, C, 1, 1), dtype=jnp.float32,
                               minval=-bound1, maxval=bound1)
    bound2 = 1.0 / np.sqrt(Cr * 1 * 1)
    w_fc2 = jax.random.uniform(k2, (C, Cr, 1, 1), dtype=jnp.float32,
                               minval=-bound2, maxval=bound2)

    out = jax.block_until_ready(channel_attention(x, w_fc1, w_fc2))
    ref = channel_attention_reference(x, w_fc1, w_fc2)
    np.testing.assert_allclose(np.asarray(out), np.asarray(ref),
                               rtol=1e-5, atol=1e-5)
    assert out.shape == (N, C, 1, 1)

    # Second config: exercises the cdiv grids (partial batch block), the HW
    # reduction axis with a masked tail chunk, and the accumulator init/finalize.
    N2, H2, W2 = 12, 20, 20                                 # HW = 400
    x2 = jax.random.normal(kx2, (N2, C, H2, W2), dtype=jnp.float32)
    out2 = jax.block_until_ready(
        channel_attention(x2, w_fc1, w_fc2, block_b=8, block_hw=128))
    ref2 = channel_attention_reference(x2, w_fc1, w_fc2)
    np.testing.assert_allclose(np.asarray(out2), np.asarray(ref2),
                               rtol=1e-5, atol=1e-5)

    print("KERNEL_OK")
</pallas_src>

<mosaic_0001>
module attributes {stable_mosaic.version = 11 : i64} {
  func.func @_channel_attention_kernel(%arg0: i32, %arg1: i32, %arg2: memref<2x32x256xf32, #tpu.memory_space<vmem>>, %arg3: memref<32x4xf32, #tpu.memory_space<vmem>>, %arg4: memref<4x32xf32, #tpu.memory_space<vmem>>, %arg5: memref<2x32xf32, #tpu.memory_space<vmem>>, %arg6: memref<2x32xf32, #tpu.memory_space<vmem>>, %arg7: memref<2x32xf32, #tpu.memory_space<vmem>>) attributes {dimension_semantics = [#tpu.dimension_semantics<parallel>, #tpu.dimension_semantics<arbitrary>], iteration_bounds = array<i64: 1, 1>, scalar_prefetch = 0 : i64, scratch_operands = 2 : i64, tpu.core_type = #tpu.core_type<tc>, window_params = [{transform_indices = @transform_0, window_bounds = array<i64: 2, 32, 256>}, {pipeline_mode = #tpu.pipeline_mode<synchronous>, transform_indices = @transform_1, window_bounds = array<i64: 32, 4>}, {pipeline_mode = #tpu.pipeline_mode<synchronous>, transform_indices = @transform_2, window_bounds = array<i64: 4, 32>}, {transform_indices = @transform_3, window_bounds = array<i64: 2, 32>}]} {
    %c0_i32 = arith.constant 0 : i32
    %0 = arith.cmpi eq, %arg1, %c0_i32 : i32
    %1 = arith.extui %0 : i1 to i32
    %c0_i32_0 = arith.constant 0 : i32
    %2 = arith.cmpi ne, %1, %c0_i32_0 : i32
    scf.if %2 {
      %cst_18 = arith.constant 0.000000e+00 : f32
      %48 = vector.broadcast %cst_18 : f32 to vector<2x32xf32>
      %c0_19 = arith.constant 0 : index
      %c0_20 = arith.constant 0 : index
      %49 = vector.load %arg6[%c0_19, %c0_20] : memref<2x32xf32, #tpu.memory_space<vmem>>, vector<2x32xf32>
      tpu.vector_store %arg6[%c0_19, %c0_20], %48 {strides = array<i32>} : memref<2x32xf32, #tpu.memory_space<vmem>>, vector<2x32xf32>,
      %cst_21 = arith.constant 0xFF800000 : f32
      %50 = vector.broadcast %cst_21 : f32 to vector<2x32xf32>
      %c0_22 = arith.constant 0 : index
      %c0_23 = arith.constant 0 : index
      %51 = vector.load %arg7[%c0_22, %c0_23] : memref<2x32xf32, #tpu.memory_space<vmem>>, vector<2x32xf32>
      tpu.vector_store %arg7[%c0_22, %c0_23], %50 {strides = array<i32>} : memref<2x32xf32, #tpu.memory_space<vmem>>, vector<2x32xf32>,
    } else {
    }
    %c0_i32_1 = arith.constant 0 : i32
    %3 = arith.index_cast %c0_i32_1 : i32 to index
    %c0 = arith.constant 0 : index
    %c0_2 = arith.constant 0 : index
    %4 = vector.load %arg2[%3, %c0, %c0_2] : memref<2x32x256xf32, #tpu.memory_space<vmem>>, vector<1x32x256xf32>
    %5 = vector.shape_cast %4 : vector<1x32x256xf32> to vector<32x256xf32>
    %6 = arith.index_cast %c0_i32_1 : i32 to index
    %c0_3 = arith.constant 0 : index
    %7 = vector.load %arg6[%6, %c0_3] : memref<2x32xf32, #tpu.memory_space<vmem>>, vector<1x32xf32>
    %8 = vector.shape_cast %7 : vector<1x32xf32> to vector<32xf32>
    %cst = arith.constant dense<0.000000e+00> : vector<32xf32>
    %9 = vector.multi_reduction <add>, %5, %cst [1] : vector<32x256xf32> to vector<32xf32>
    %10 = arith.addf %8, %9 : vector<32xf32>
    %11 = arith.index_cast %c0_i32_1 : i32 to index
    %c0_4 = arith.constant 0 : index
    %12 = vector.load %arg6[%11, %c0_4] : memref<2x32xf32, #tpu.memory_space<vmem>>, vector<1x32xf32>
    %13 = vector.shape_cast %12 : vector<1x32xf32> to vector<32xf32>
    %14 = vector.shape_cast %10 : vector<32xf32> to vector<1x32xf32>
    tpu.vector_store %arg6[%11, %c0_4], %14 {strides = array<i32>} : memref<2x32xf32, #tpu.memory_space<vmem>>, vector<1x32xf32>,
    %15 = arith.index_cast %c0_i32_1 : i32 to index
    %c0_5 = arith.constant 0 : index
    %16 = vector.load %arg7[%15, %c0_5] : memref<2x32xf32, #tpu.memory_space<vmem>>, vector<1x32xf32>
    %17 = vector.shape_cast %16 : vector<1x32xf32> to vector<32xf32>
    %cst_6 = arith.constant dense<0xFF800000> : vector<32xf32>
    %18 = vector.multi_reduction <maximumf>, %5, %cst_6 [1] : vector<32x256xf32> to vector<32xf32>
    %19 = arith.maximumf %17, %18 : vector<32xf32>
    %20 = arith.index_cast %c0_i32_1 : i32 to index
    %c0_7 = arith.constant 0 : index
    %21 = vector.load %arg7[%20, %c0_7] : memref<2x32xf32, #tpu.memory_space<vmem>>, vector<1x32xf32>
    %22 = vector.shape_cast %21 : vector<1x32xf32> to vector<32xf32>
    %23 = vector.shape_cast %19 : vector<32xf32> to vector<1x32xf32>
    tpu.vector_store %arg7[%20, %c0_7], %23 {strides = array<i32>} : memref<2x32xf32, #tpu.memory_space<vmem>>, vector<1x32xf32>,
    %c1_i32 = arith.constant 1 : i32
    %24 = arith.index_cast %c1_i32 : i32 to index
    %c0_8 = arith.constant 0 : index
    %c0_9 = arith.constant 0 : index
    %25 = vector.load %arg2[%24, %c0_8, %c0_9] : memref<2x32x256xf32, #tpu.memory_space<vmem>>, vector<1x32x256xf32>
    %26 = vector.shape_cast %25 : vector<1x32x256xf32> to vector<32x256xf32>
    %27 = arith.index_cast %c1_i32 : i32 to index
    %c0_10 = arith.constant 0 : index
    %28 = vector.load %arg6[%27, %c0_10] : memref<2x32xf32, #tpu.memory_space<vmem>>, vector<1x32xf32>
    %29 = vector.shape_cast %28 : vector<1x32xf32> to vector<32xf32>
    %cst_11 = arith.constant dense<0.000000e+00> : vector<32xf32>
    %30 = vector.multi_reduction <add>, %26, %cst_11 [1] : vector<32x256xf32> to vector<32xf32>
    %31 = arith.addf %29, %30 : vector<32xf32>
    %32 = arith.index_cast %c1_i32 : i32 to index
    %c0_12 = arith.constant 0 : index
    %33 = vector.load %arg6[%32, %c0_12] : memref<2x32xf32, #tpu.memory_space<vmem>>, vector<1x32xf32>
    %34 = vector.shape_cast %33 : vector<1x32xf32> to vector<32xf32>
    %35 = vector.shape_cast %31 : vector<32xf32> to vector<1x32xf32>
    tpu.vector_store %arg6[%32, %c0_12], %35 {strides = array<i32>} : memref<2x32xf32, #tpu.memory_space<vmem>>, vector<1x32xf32>,
    %36 = arith.index_cast %c1_i32 : i32 to index
    %c0_13 = arith.constant 0 : index
    %37 = vector.load %arg7[%36, %c0_13] : memref<2x32xf32, #tpu.memory_space<vmem>>, vector<1x32xf32>
    %38 = vector.shape_cast %37 : vector<1x32xf32> to vector<32xf32>
    %cst_14 = arith.constant dense<0xFF800000> : vector<32xf32>
    %39 = vector.multi_reduction <maximumf>, %26, %cst_14 [1] : vector<32x256xf32> to vector<32xf32>
    %40 = arith.maximumf %38, %39 : vector<32xf32>
    %41 = arith.index_cast %c1_i32 : i32 to index
    %c0_15 = arith.constant 0 : index
    %42 = vector.load %arg7[%41, %c0_15] : memref<2x32xf32, #tpu.memory_space<vmem>>, vector<1x32xf32>
    %43 = vector.shape_cast %42 : vector<1x32xf32> to vector<32xf32>
    %44 = vector.shape_cast %40 : vector<32xf32> to vector<1x32xf32>
    tpu.vector_store %arg7[%41, %c0_15], %44 {strides = array<i32>} : memref<2x32xf32, #tpu.memory_space<vmem>>, vector<1x32xf32>,
    %c2_i32 = arith.constant 2 : i32
    %c0_i32_16 = arith.constant 0 : i32
    %45 = arith.cmpi eq, %arg1, %c0_i32_16 : i32
    %46 = arith.extui %45 : i1 to i32
    %c0_i32_17 = arith.constant 0 : i32
    %47 = arith.cmpi ne, %46, %c0_i32_17 : i32
    scf.if %47 {
      %c0_18 = arith.constant 0 : index
      %c0_19 = arith.constant 0 : index
      %48 = vector.load %arg6[%c0_18, %c0_19] : memref<2x32xf32, #tpu.memory_space<vmem>>, vector<2x32xf32>
      %cst_20 = arith.constant 3.906250e-03 : f32
      %49 = vector.broadcast %cst_20 : f32 to vector<2x32xf32>
      %50 = arith.mulf %48, %49 : vector<2x32xf32>
      %c0_21 = arith.constant 0 : index
      %c0_22 = arith.constant 0 : index
      %51 = vector.load %arg7[%c0_21, %c0_22] : memref<2x32xf32, #tpu.memory_space<vmem>>, vector<2x32xf32>
      %c0_23 = arith.constant 0 : index
      %c0_24 = arith.constant 0 : index
      %52 = vector.load %arg3[%c0_23, %c0_24] : memref<32x4xf32, #tpu.memory_space<vmem>>, vector<32x4xf32>
      %cst_25 = arith.constant dense<0.000000e+00> : vector<2x4xf32>
      %53 = tpu.matmul %50, %52, %cst_25 {dimension_numbers = #tpu.dot_dimension_numbers<[1], [0], [0], [1], [0, 0, 1, 1], [], []>} : vector<2x32xf32>, vector<32x4xf32>, vector<2x4xf32> -> vector<2x4xf32>
      %cst_26 = arith.constant 0.000000e+00 : f32
      %54 = vector.broadcast %cst_26 : f32 to vector<2x4xf32>
      %55 = arith.maximumf %53, %54 : vector<2x4xf32>
      %c0_27 = arith.constant 0 : index
      %c0_28 = arith.constant 0 : index
      %56 = vector.load %arg3[%c0_27, %c0_28] : memref<32x4xf32, #tpu.memory_space<vmem>>, vector<32x4xf32>
      %cst_29 = arith.constant dense<0.000000e+00> : vector<2x4xf32>
      %57 = tpu.matmul %51, %56, %cst_29 {dimension_numbers = #tpu.dot_dimension_numbers<[1], [0], [0], [1], [0, 0, 1, 1], [], []>} : vector<2x32xf32>, vector<32x4xf32>, vector<2x4xf32> -> vector<2x4xf32>
      %cst_30 = arith.constant 0.000000e+00 : f32
      %58 = vector.broadcast %cst_30 : f32 to vector<2x4xf32>
      %59 = arith.maximumf %57, %58 : vector<2x4xf32>
      %60 = arith.addf %55, %59 : vector<2x4xf32>
      %c0_31 = arith.constant 0 : index
      %c0_32 = arith.constant 0 : index
      %61 = vector.load %arg4[%c0_31, %c0_32] : memref<4x32xf32, #tpu.memory_space<vmem>>, vector<4x32xf32>
      %cst_33 = arith.constant dense<0.000000e+00> : vector<2x32xf32>
      %62 = tpu.matmul %60, %61, %cst_33 {dimension_numbers = #tpu.dot_dimension_numbers<[1], [0], [0], [1], [0, 0, 1, 1], [], []>} : vector<2x4xf32>, vector<4x32xf32>, vector<2x32xf32> -> vector<2x32xf32>
      %63 = arith.negf %62 : vector<2x32xf32>
      %64 = math.exp %63 : vector<2x32xf32>
      %cst_34 = arith.constant 1.000000e+00 : f32
      %65 = vector.broadcast %cst_34 : f32 to vector<2x32xf32>
      %66 = arith.addf %65, %64 : vector<2x32xf32>
      %67 = arith.divf %65, %66 : vector<2x32xf32>
      %c0_35 = arith.constant 0 : index
      %c0_36 = arith.constant 0 : index
      %68 = vector.load %arg5[%c0_35, %c0_36] : memref<2x32xf32, #tpu.memory_space<vmem>>, vector<2x32xf32>
      tpu.vector_store %arg5[%c0_35, %c0_36], %67 {strides = array<i32>} : memref<2x32xf32, #tpu.memory_space<vmem>>, vector<2x32xf32>,
    } else {
    }
    return
  }
  func.func @transform_0(%arg0: i32, %arg1: i32) -> (i32, i32, i32) {
    %c0_i32 = arith.constant 0 : i32
    %c0_i32_0 = arith.constant 0 : i32
    return %arg0, %c0_i32, %arg1 : i32, i32, i32
  }
  func.func @transform_1(%arg0: i32, %arg1: i32) -> (i32, i32) {
    %c0_i32 = arith.constant 0 : i32
    %c0_i32_0 = arith.constant 0 : i32
    %c0_i32_1 = arith.constant 0 : i32
    return %c0_i32, %c0_i32_0 : i32, i32
  }
  func.func @transform_2(%arg0: i32, %arg1: i32) -> (i32, i32) {
    %c0_i32 = arith.constant 0 : i32
    %c0_i32_0 = arith.constant 0 : i32
    %c0_i32_1 = arith.constant 0 : i32
    return %c0_i32, %c0_i32_0 : i32, i32
  }
  func.func @transform_3(%arg0: i32, %arg1: i32) -> (i32, i32) {
    %c0_i32 = arith.constant 0 : i32
    %c0_i32_0 = arith.constant 0 : i32
    return %arg0, %c0_i32 : i32, i32
  }
}

</mosaic_0001>

<bundles_post_ra>
// kernel: tpu_custom_call.1
= control target key start
LH: loop header
LB: loop body
LE: loop exit
PB: predicated region body
PF: predicated region fallthrough
CT: control target
= control target key end

     0   :  { %8 = vsyncpa [#allocation5], 0  ;;  %s692_s0 = inlined_call_operand.hbm [shape: f32[2,32,256], index: 0, kind: input, shape index: {}]   ;;  %s693_s1 = inlined_call_operand.vmem [shape: f32[32,4], index: 1, kind: input, shape index: {}]   ;;  %s694_s2 = inlined_call_operand.vmem [shape: f32[4,32], index: 2, kind: input, shape index: {}]   ;;  %s695_s3 = inlined_call_operand.hbm [shape: f32[2,32], index: 3, kind: output, shape index: {}]  }
   0x1   :  { %9 = vsyncpa [#allocation6], 0  ;;  %s596_s12 = smov [#allocation4]   ;;  %s548_s16 = scalar_lea.hbm %s692_s0, 2048 }
   0x2   :  { %s15_s13 = sshll.u32 %s596_s12, 4  ;;  %p549_p0 = scmp.ne.s32.totalorder %s692_s0, %s548_s16  ;;  %s16_s13 = int_to_ptr.vmem [resolvable:$true] %s15_s13 }
   0x3   :  { %p552_p1 = scmp.lt.u32.totalorder %s548_s16, %s692_s0 }
   0x5   :  { %p554_p2 = pnand %p552_p1, %p549_p0 }
   0x7   :  { %557 = shalt.err (!%p554_p2)
}
   0x8   :  { %s558_s21 = scalar_lea.vmem %s16_s13, 2048  ;;  %p563_p4 = scmp.lt.s32.totalorder %s16_s13, %s16_s13 }
   0x9   :  { %p559_p3 = scmp.ne.s32.totalorder %s16_s13, %s558_s21  ;;  %p564_p5 = scmp.lt.s32.totalorder %s558_s21, %s558_s21 }
   0xb   :  { %p565_p6 = por %p564_p5, %p563_p4 }
   0xd   :  { %p566_p7 = pnand %p565_p6, %p559_p3 }
   0xf   :  { %569 = shalt.err (!%p566_p7)
}
  0x10   :  { %s597_s22 = smov 256   ;;  %s598_s23 = smov 16  }
  0x11   :  { %21 = dma.hbm_to_vmem [thread:$0]  %s692_s0, 2048, %s16_s13, [#allocation5], %s597_s22, %s597_s22, %s598_s23  }
  0x12   :  { %592 = dma.done.wait [#allocation5], 2048  }
  0x13   :  { %593 = vsyncadd [#allocation5], 4294965248  ;;  %v132_v0 = vld [vmem:[#allocation4 + $0x40] sm:$0xff]  ;;  %v133_v1 = vld [vmem:[#allocation4 + $0x48] sm:$0xff]  ;;  %vm33_vm0 = vcmask 254976   ;;  %v599_v30 = vmov 0.0   ;;  %v61_v41 = vlaneseq }
  0x14   :  { %v36_v2 = vld [vmem:[#allocation4] sm:$0xff]  ;;  %v141_v3 = vadd.f32 %v133_v1, %v132_v0  ;;  %v37_v4 = vld [vmem:[#allocation4 + $0x8] sm:$0xff]  ;;  %v134_v5 = vld [vmem:[#allocation4 + $0x50] sm:$0xff]  ;;  %v180_v27 = vmax.f32 %v132_v0, %v133_v1  ;;  %34 = vst.msk [vmem:[#allocation2] sm:$0x3] %vm33_vm0, %v599_v30  ;;  %v600_v36 = vmov 0.0|0.0  }
  0x15   :  { %v135_v6 = vld [vmem:[#allocation4 + $0x58] sm:$0xff]  ;;  %v45_v7 = vadd.f32 %v37_v4, %v36_v2  ;;  %v38_v8 = vld [vmem:[#allocation4 + $0x10] sm:$0xff]  ;;  %v136_v12 = vld [vmem:[#allocation4 + $0x60] sm:$0xff]  ;;  %v93_v20 = vmax.f32 %v36_v2, %v37_v4  ;;  %524 = vmatprep.subr.bf16.mxu0 %v600_v36  ;;  %v601_v37 = vmov -inf   ;;  %530 = vmatprep.subr.bf16.mxu1 %v600_v36  ;;  %vm602_vm1 = vmmov 0   ;;  %s603_s7 = smov [#allocation7]  }
  0x16   :  { %v39_v9 = vld [vmem:[#allocation4 + $0x18] sm:$0xff]  ;;  %142 = vadd.xlane.f32.xlu1 %v141_v3  ;;  %v144_v10 = vadd.f32 %v135_v6, %v134_v5  ;;  %v137_v13 = vld [vmem:[#allocation4 + $0x68] sm:$0xff]  ;;  %v40_v14 = vld [vmem:[#allocation4 + $0x20] sm:$0xff]  ;;  %v183_v26 = vmax.f32 %v134_v5, %v135_v6  ;;  %35 = vst.msk [vmem:[#allocation3] sm:$0x3] %vm33_vm0, %v601_v37  ;;  %505 = vmatprep.mubr.msk.f32.mxu0 %vm602_vm1, %v599_v30  ;;  %v62_v42 = vand.u32 127, %v61_v41 }
  0x17   :  { %46 = vadd.xlane.f32.xlu0 %v45_v7  ;;  %v48_v11 = vadd.f32 %v39_v9, %v38_v8  ;;  %v41_v15 = vld [vmem:[#allocation4 + $0x28] sm:$0xff]  ;;  %v147_v16 = vadd.f32 %v137_v13, %v136_v12  ;;  %v42_v18 = vld [vmem:[#allocation4 + $0x30] sm:$0xff]  ;;  %v43_v19 = vld [vmem:[#allocation4 + $0x38] sm:$0xff]  ;;  %v96_v25 = vmax.f32 %v38_v8, %v39_v9  ;;  %v186_v28 = vmax.f32 %v136_v12, %v137_v13 }
  0x18   :  { %v51_v17 = vadd.f32 %v41_v15, %v40_v14  ;;  %v54_v21 = vadd.f32 %v43_v19, %v42_v18  ;;  %v138_v22 = vld [vmem:[#allocation4 + $0x70] sm:$0xff]  ;;  %v139_v23 = vld [vmem:[#allocation4 + $0x78] sm:$0xff]  ;;  %v99_v29 = vmax.f32 %v40_v14, %v41_v15  ;;  %v102_v32 = vmax.f32 %v42_v18, %v43_v19  ;;  %v225_v34 = vld [vmem:[%s693_s1 + $0x8] sm:$0xff]  ;;  %516 = vmatprep.mubr.msk.f32.mxu1 %vm602_vm1, %v599_v30 }
  0x19   :  { %v150_v24 = vadd.f32 %v139_v23, %v138_v22  ;;  %v189_v31 = vmax.f32 %v138_v22, %v139_v23  ;;  %v224_v33 = vld [vmem:[%s693_s1] sm:$0xff]  ;;  %v226_v38 = vld [vmem:[%s693_s1 + $0x10] sm:$0xff]  ;;  %v227_v39 = vld [vmem:[%s693_s1 + $0x18] sm:$0xff]  ;;  %v67_v45 = vadd.s32 4294967288, %v62_v42  ;;  %v74_v46 = vadd.s32 4294967280, %v62_v42 }
  0x1a   :  { %145 = vadd.xlane.f32.xlu1 %v144_v10  ;;  %v525_v35 = vpack.c.bf16 %v225_v34, %v224_v33  ;;  %v528_v40 = vpack.c.bf16 %v227_v39, %v226_v38  ;;  %v64_v47 = vshrl.u32 %v61_v41, 7  ;;  %v81_v51 = vadd.s32 4294967272, %v62_v42 }
  0x1b   :  { %49 = vadd.xlane.f32.xlu0 %v48_v11  ;;  %vm72_vm2 = vcmask 130112   ;;  %vm79_vm3 = vcmask 195712   ;;  %vm86_vm4 = vcmask 261312   ;;  %v44_v2 = vld [vmem:[#allocation2] sm:$0x1]  ;;  %vm90_vm5 = vcmask 253952  }
  0x1c   :  { %526 = vmatpush3.bf16.msra.mxu0 %v525_v35  ;;  %532 = vmatpush3.bf16.msra.mxu1 %v525_v35  ;;  %v70_v50 = vsub.s32 %v67_v45, %v64_v47  ;;  %v77_v52 = vsub.s32 %v74_v46, %v64_v47  ;;  %v65_v53 = vsub.s32 %v62_v42, %v64_v47  ;;  %v140_v11 = vld [vmem:[#allocation2 + $0x1] sm:$0x1]  ;;  %vm228_vm6 = vcmask 261120  }
  0x1d   :  { %527 = vmatprep.subr.bf16.mxu0 %v600_v36  ;;  %533 = vmatprep.subr.bf16.mxu1 %v600_v36  ;;  %v84_v57 = vsub.s32 %v81_v51, %v64_v47  ;;  %v92_v34 = vld [vmem:[#allocation3] sm:$0x1]  ;;  %vm383_vm7 = vcmask 1043456   ;;  %vm379_vm8 = vcmask 31744  }
  0x1e   :  { %148 = vadd.xlane.f32.xlu1 %v147_v16 }
  0x1f   :  { %52 = vadd.xlane.f32.xlu0 %v51_v17 }
  0x20   :  { %529 = vmatpush3.bf16.msra.mxu0 %v528_v40  ;;  %535 = vmatpush3.bf16.msra.mxu1 %v528_v40 }
  0x21   :  { %519 = vmatprep.subr.mxu0 %v599_v30 }
  0x22   :  { %94 = vmax.xlane.f32.xlu1 %v93_v20 }
  0x23   :  { %55 = vadd.xlane.f32.xlu0 %v54_v21 }
  0x26   :  { %151 = vadd.xlane.f32.xlu1 %v150_v24 }
  0x27   :  { %97 = vmax.xlane.f32.xlu0 %v96_v25 }
  0x2a   :  { %184 = vmax.xlane.f32.xlu1 %v183_v26 }
  0x2b   :  { %181 = vmax.xlane.f32.xlu0 %v180_v27  ;;  %v179_v27 = vld [vmem:[#allocation3 + $0x1] sm:$0x1] }
  0x2e   :  { %187 = vmax.xlane.f32.xlu1 %v186_v28 }
  0x2f   :  { %100 = vmax.xlane.f32.xlu0 %v99_v29 }
  0x32   :  { %190 = vmax.xlane.f32.xlu1 %v189_v31 }
  0x33   :  { %103 = vmax.xlane.f32.xlu0 %v102_v32 }
  0xa3   :  { %v143_v43 = vpop.xlane.xlu1 %142 }
  0xa4   :  { %v47_v44 = vpop.xlane.xlu0 %46  ;;  %v160_v3 = vrot.slane %v143_v43, %v65_v53  ;;  %v378_v43 = vld [vmem:[%s694_s2] sm:$0xf]  ;;  %s471_s2 = sshll.u32 %s603_s7, 4  ;;  %s472_s2 = int_to_ptr.vmem [resolvable:$true] %s471_s2 }
  0xa5   :  { %v66_v59 = vrot.slane %v47_v44, %v65_v53  ;;  %s570_s8 = scalar_lea.vmem %s472_s2, 32  ;;  %p575_p9 = scmp.lt.s32.totalorder %s472_s2, %s472_s2 }
  0xa6   :  { %p571_p8 = scmp.ne.s32.totalorder %s472_s2, %s570_s8  ;;  %p576_p10 = scmp.lt.s32.totalorder %s570_s8, %s570_s8 }
  0xa7   :  { %v146_v48 = vpop.xlane.xlu1 %145 }
  0xa8   :  { %v50_v49 = vpop.xlane.xlu0 %49  ;;  %v164_v61 = vrot.slane %v146_v48, %v70_v50  ;;  %p577_p11 = por %p576_p10, %p575_p9 }
  0xa9   :  { %v71_v56 = vrot.slane %v50_v49, %v70_v50 }
  0xaa   :  { %v165_v7 = vsel %vm72_vm2, %v164_v61, %v160_v3  ;;  %p578_p12 = pnand %p577_p11, %p571_p8 }
  0xab   :  { %v149_v54 = vpop.xlane.xlu1 %148  ;;  %v73_v63 = vsel %vm72_vm2, %v71_v56, %v66_v59 }
  0xac   :  { %v53_v55 = vpop.xlane.xlu0 %52  ;;  %v169_v0 = vrot.slane %v149_v54, %v77_v52 }
  0xad   :  { %v78_v58 = vrot.slane %v53_v55, %v77_v52 }
  0xae   :  { %v170_v12 = vsel %vm79_vm3, %v169_v0, %v165_v7 }
  0xaf   :  { %v95_v60 = vpop.xlane.xlu1 %94  ;;  %v80_v4 = vsel %vm79_vm3, %v78_v58, %v73_v63 }
  0xb0   :  { %v56_v62 = vpop.xlane.xlu0 %55  ;;  %v112_v24 = vrot.slane %v95_v60, %v65_v53 }
  0xb1   :  { %v85_v1 = vrot.slane %v56_v62, %v84_v57 }
  0xb3   :  { %v87_v5 = vsel %vm86_vm4, %v85_v1, %v80_v4  ;;  %v152_v6 = vpop.xlane.xlu1 %151 }
  0xb4   :  { %v174_v8 = vrot.slane %v152_v6, %v84_v57  ;;  %v98_v9 = vpop.xlane.xlu0 %97  ;;  %v89_v10 = vadd.f32 %v87_v5, %v44_v2 }
  0xb5   :  { %v116_v21 = vrot.slane %v98_v9, %v70_v50 }
  0xb6   :  { %v175_v13 = vsel %vm86_vm4, %v174_v8, %v170_v12  ;;  %91 = vst.msk [vmem:[#allocation2] sm:$0x1] %vm90_vm5, %v89_v10 }
  0xb7   :  { %v185_v14 = vpop.xlane.xlu1 %184  ;;  %v177_v15 = vadd.f32 %v175_v13, %v140_v11  ;;  %v117_v32 = vsel %vm72_vm2, %v116_v21, %v112_v24 }
  0xb8   :  { %v182_v16 = vpop.xlane.xlu0 %181  ;;  %v203_v18 = vrot.slane %v185_v14, %v70_v50 }
  0xb9   :  { %178 = vst.msk [vmem:[#allocation2 + $0x1] sm:$0x1] %vm90_vm5, %v177_v15  ;;  %v199_v19 = vrot.slane %v182_v16, %v65_v53 }
  0xbb   :  { %v188_v17 = vpop.xlane.xlu1 %187  ;;  %v204_v26 = vsel %vm72_vm2, %v203_v18, %v199_v19 }
  0xbc   :  { %v101_v20 = vpop.xlane.xlu0 %100  ;;  %v208_v22 = vrot.slane %v188_v17, %v77_v52 }
  0xbd   :  { %v121_v23 = vrot.slane %v101_v20, %v77_v52 }
  0xbe   :  { %v209_v33 = vsel %vm79_vm3, %v208_v22, %v204_v26 }
  0xbf   :  { %v191_v25 = vpop.xlane.xlu1 %190  ;;  %v122_v37 = vsel %vm79_vm3, %v121_v23, %v117_v32 }
  0xc0   :  { %v213_v28 = vrot.slane %v191_v25, %v84_v57  ;;  %v104_v29 = vpop.xlane.xlu0 %103  ;;  %v221_v31 = vld [vmem:[#allocation2] sm:$0x3] }
  0xc1   :  { %v126_v35 = vrot.slane %v104_v29, %v84_v57  ;;  %v222_v36 = vmul.f32 0.00390625, %v221_v31 }
  0xc2   :  { %v214_v38 = vsel %vm86_vm4, %v213_v28, %v209_v33 }
  0xc3   :  { %v216_v39 = vmax.f32 %v179_v27, %v214_v38  ;;  %v127_v40 = vsel %vm86_vm4, %v126_v35, %v122_v37  ;;  %506 = vmatmul.mubr.msk.f32.vlgmr.msra.gmra.mrb[0].mxu0 %vm228_vm6, %v222_v36 }
  0xc4   :  { %v129_v41 = vmax.f32 %v92_v34, %v127_v40  ;;  %521 = vmatprep.mubr.msk.f32.mxu0 %vm602_vm1, %v599_v30  ;;  %520 = vmatpush3.msk.msra.mxu0 %vm383_vm7, %v378_v43 }
  0xc5   :  { %217 = vst.msk [vmem:[#allocation3 + $0x1] sm:$0x1] %vm90_vm5, %v216_v39 }
  0xc6   :  { %130 = vst.msk [vmem:[#allocation3] sm:$0x1] %vm90_vm5, %v129_v41 }
  0xcd   :  { %v223_v42 = vld [vmem:[#allocation3] sm:$0x3] }
  0xce   :  { %517 = vmatmul.mubr.msk.f32.vlgmr.msra.gmra.mrb[0].mxu1 %vm228_vm6, %v223_v42 }
 0x196   :  { %v298_v44 = vpop.f32.mrb[0].mxu0 }
 0x197   :  { %v507_v45 = vpop.f32.mrb[1].mxu0  ;;  %v302_v47 = vmax.f32 %v298_v44, 0.0 }
 0x1a1   :  { %v372_v46 = vpop.f32.mrb[0].mxu1 }
 0x1a2   :  { %v376_v48 = vmax.f32 %v372_v46, 0.0  ;;  %v518_v49 = vpop.f32.mrb[1].mxu1 }
 0x1a4   :  { %v377_v30 = vadd.f32 %v376_v48, %v302_v47 }
 0x1a6   :  { %522 = vmatmul.mubr.msk.f32.vlgmr.msra.gmra.mrb[2].mxu0 %vm379_vm8, %v377_v30 }
 0x279   :  { %v453_v50 = vpop.f32.mrb[2].mxu0 }
 0x27a   :  { %v484_v51 = vmul.f32 -1.442695, %v453_v50  ;;  %v523_v52 = vpop.f32.mrb[3].mxu0 }
 0x27c   :  { %544 = vpow2.f32 %v484_v51 }
 0x286   :  { %v545_v53 = vpop.eup %544 }
 0x287   :  { %v460_v54 = vadd.f32 1.0, %v545_v53 }
 0x289   :  { %546 = vrcp.f32 %v460_v54 }
 0x293   :  { %v547_v55 = vpop.eup %546 }
 0x294   :  { %464 = vst.msk [vmem:[#allocation7] sm:$0x3] %vm33_vm0, %v547_v55 }
 0x295   :  { %581 = shalt.err (!%p578_p12)
}
 0x296   :  { %s582_s11 = scalar_lea.hbm %s695_s3, 32 }
 0x297   :  { %p583_p13 = scmp.ne.s32.totalorder %s695_s3, %s582_s11  ;;  %p586_p0 = scmp.lt.u32.totalorder %s582_s11, %s695_s3 }
 0x299   :  { %p588_p1 = pnand %p586_p0, %p583_p13 }
 0x29b   :  { %591 = shalt.err (!%p588_p1)
}
 0x29c   :  { %474 = dma.vmem_to_hbm [thread:$0]  %s472_s2, 32, %s695_s3, [#allocation6]  }
 0x29d   :  { %594 = dma.done.wait [#allocation6], 32  }
 0x29e   :  { %595 = vsyncadd [#allocation6], 4294967264 }
 0x29f   :  { %478 = vsyncpa [#allocation5], 1 }
 0x2a0   :  { %479 = vsyncpa [#allocation6], 1 }

</bundles_post_ra>
